<compile_context>
chip_gen: v7x
topology: tpu7x:2x2x1
jax: 0.10.0
libtpu: 0.0.40
codegen_flags: <defaults>
</compile_context>

<pallas_src>
import functools

import jax
import jax.numpy as jnp
from jax.experimental import pallas as pl
from jax.experimental.pallas import tpu as pltpu


def _round_up(x, m):
    return ((x + m - 1) // m) * m


def _causal_conv1d_kernel(x_ref, w_ref, b_ref, o_ref, *,
                          kernel_size, dilation, batch_block):
    # x_ref: (B_blk, Cin, Tp)   causally (left) padded input, Tp % 128 == 0
    # w_ref: (Cout, K*Cin)      fused weight, w[o, k*Cin + c] == weight[o, c, k]
    # b_ref: (Cout, 1)          bias (f32)
    # o_ref: (B_blk, Cout, Tp)  lane-dense output; wrapper trims time to t_out
    tp = x_ref.shape[-1]
    w = w_ref[...]            # weight/bias blocks are grid-resident (index_map -> (0, 0))
    b = b_ref[...]
    for bb in range(batch_block):                          # small static unroll (capped)
        xp = x_ref[bb]                                     # (Cin, Tp)
        if kernel_size == 1:
            x_stack = xp
        else:
            parts = [xp]
            for tap in range(1, kernel_size):
                # output position t needs x_pad[t + tap*dilation]:
                # left-rotate by tap*dilation == right-rotate by (Tp - tap*dilation).
                # XLU lane rotation on the lane-aligned full tile (no realign copies);
                # the wrapped lanes land past t_out and are trimmed by the wrapper.
                parts.append(pltpu.roll(xp, shift=tp - tap * dilation, axis=1))
            x_stack = jnp.concatenate(parts, axis=0)       # (K*Cin, Tp)
        acc = jnp.dot(w, x_stack, preferred_element_type=jnp.float32)  # one MXU push
        o_ref[bb] = (acc + b).astype(o_ref.dtype)


def causal_conv1d(x, weight, bias, *, padding, dilation=1, stride=1,
                  compute_dtype=None, batch_block=None):
    """Replicates CausualConv.forward: Conv1d(pad=padding*2) then x[:, :, :-padding*2]."""
    assert stride == 1, "only stride=1 (module default) is implemented"
    assert padding >= 1, "module's `x[:, :, :-self.padding]` requires padding > 0"
    B, Cin, T = x.shape
    Cout, Cin_w, K = weight.shape
    assert Cin_w == Cin
    pad = padding * 2                                     # self.padding in the module

    # conv output length with symmetric pad, minus the right-side trim of `pad`:
    t_out = T + pad - dilation * (K - 1)
    assert t_out > 0
    # Lane-dense padded time extent: covers every tap read (t_out - 1 + d*(K-1)
    # = T + pad - 1 max index) and is a multiple of 128 so input and output
    # tiles are lane-dense (unmasked vld/vst).
    t_p = _round_up(T + pad, 128)

    # Causal (left-only) zero pad; right zeros exist only to reach the 128 boundary.
    x_pad = jnp.pad(x, ((0, 0), (0, 0), (pad, t_p - (T + pad))))

    # Fused weight (Cout, K*Cin); row order matches the in-kernel shifted stack.
    w2d = jnp.transpose(weight, (0, 2, 1)).reshape(Cout, K * Cin)
    bias2d = bias.reshape(Cout, 1).astype(jnp.float32)

    if compute_dtype is not None:        # e.g. jnp.bfloat16: halves input DMA bytes
        x_pad = x_pad.astype(compute_dtype)
        w2d = w2d.astype(compute_dtype)

    # Batch several elements per grid step (~512 KiB of input per step) to
    # amortize per-step pipeline overhead, but cap the static unroll at 16.
    if batch_block is None:
        per_elem = Cin * t_p * x_pad.dtype.itemsize
        batch_block = int(max(1, min(B, 16, (512 * 1024) // max(per_elem, 1))))
    b_pad = _round_up(B, batch_block)
    if b_pad != B:
        x_pad = jnp.pad(x_pad, ((0, b_pad - B), (0, 0), (0, 0)))

    kernel = functools.partial(_causal_conv1d_kernel, kernel_size=K,
                               dilation=dilation, batch_block=batch_block)

    out = pl.pallas_call(
        kernel,
        out_shape=jax.ShapeDtypeStruct((b_pad, Cout, t_p), x.dtype),
        grid_spec=pltpu.PrefetchScalarGridSpec(
            num_scalar_prefetch=0,
            grid=(b_pad // batch_block,),
            in_specs=[
                pl.BlockSpec((batch_block, Cin, t_p), lambda i: (i, 0, 0)),
                pl.BlockSpec((Cout, K * Cin), lambda i: (0, 0)),   # resident weight
                pl.BlockSpec((Cout, 1), lambda i: (0, 0)),         # resident bias
            ],
            out_specs=pl.BlockSpec((batch_block, Cout, t_p), lambda i: (i, 0, 0)),
        ),
        compiler_params=pltpu.CompilerParams(
            dimension_semantics=("parallel",)),
    )(x_pad, w2d, bias2d)

    # trim the batch padding and the lane-alignment tail of the time axis
    return out[:B, :, :t_out]


def init_params(key, in_channels, out_channels, kernel_size, w_init_gain="linear"):
    """Deterministic xavier_uniform (gain('linear')=1.0) + PyTorch-style bias init."""
    kw, kb = jax.random.split(key)
    gain = 1.0
    fan_in = in_channels * kernel_size
    fan_out = out_channels * kernel_size
    bound_w = gain * (6.0 / (fan_in + fan_out)) ** 0.5
    weight = jax.random.uniform(
        kw, (out_channels, in_channels, kernel_size),
        minval=-bound_w, maxval=bound_w, dtype=jnp.float32)
    bound_b = 1.0 / (fan_in ** 0.5)
    bias = jax.random.uniform(
        kb, (out_channels,), minval=-bound_b, maxval=bound_b, dtype=jnp.float32)
    return weight, bias


def reference_causal_conv1d(x, weight, bias, *, padding, dilation=1):
    """Pure-JAX reference (pad-both-sides conv, then right trim), for sanity check."""
    pad = padding * 2
    y = jax.lax.conv_general_dilated(
        x, weight,
        window_strides=(1,),
        padding=[(pad, pad)],
        rhs_dilation=(dilation,),
        dimension_numbers=("NCH", "OIH", "NCH"))
    y = y + bias.reshape(1, -1, 1)
    return y[:, :, :-pad]


if __name__ == "__main__":
    # Module config: in=4, out=8, kernel_size=3, stride=1, padding=1, dilation=1
    B, Cin, Cout, T, K, PADDING, DIL = 2, 4, 8, 16, 3, 1, 1

    key = jax.random.PRNGKey(0)
    kx, kp = jax.random.split(key)
    x = jax.random.normal(kx, (B, Cin, T), dtype=jnp.float32)
    weight, bias = init_params(kp, Cin, Cout, K)

    out = causal_conv1d(x, weight, bias, padding=PADDING, dilation=DIL)
    out = jax.block_until_ready(out)

    ref = reference_causal_conv1d(x, weight, bias, padding=PADDING, dilation=DIL)
    assert out.shape == ref.shape, (out.shape, ref.shape)
    assert jnp.allclose(out, ref, atol=1e-5, rtol=1e-5), float(jnp.max(jnp.abs(out - ref)))

    print("KERNEL_OK")
</pallas_src>

<mosaic_0001>
module attributes {stable_mosaic.version = 11 : i64} {
  func.func @_causal_conv1d_kernel(%arg0: i32, %arg1: memref<2x4x128xf32, #tpu.memory_space<vmem>>, %arg2: memref<8x12xf32, #tpu.memory_space<vmem>>, %arg3: memref<8x1xf32, #tpu.memory_space<vmem>>, %arg4: memref<2x8x128xf32, #tpu.memory_space<vmem>>) attributes {dimension_semantics = [#tpu.dimension_semantics<parallel>], iteration_bounds = array<i64: 1>, scalar_prefetch = 0 : i64, scratch_operands = 0 : i64, tpu.core_type = #tpu.core_type<tc>, window_params = [{transform_indices = @transform_0, window_bounds = array<i64: 2, 4, 128>}, {pipeline_mode = #tpu.pipeline_mode<synchronous>, transform_indices = @transform_1, window_bounds = array<i64: 8, 12>}, {pipeline_mode = #tpu.pipeline_mode<synchronous>, transform_indices = @transform_2, window_bounds = array<i64: 8, 1>}, {transform_indices = @transform_3, window_bounds = array<i64: 2, 8, 128>}]} {
    %c0 = arith.constant 0 : index
    %c0_0 = arith.constant 0 : index
    %0 = vector.load %arg2[%c0, %c0_0] : memref<8x12xf32, #tpu.memory_space<vmem>>, vector<8x12xf32>
    %c0_1 = arith.constant 0 : index
    %c0_2 = arith.constant 0 : index
    %1 = vector.load %arg3[%c0_1, %c0_2] : memref<8x1xf32, #tpu.memory_space<vmem>>, vector<8x1xf32>
    %c0_3 = arith.constant 0 : index
    %c0_4 = arith.constant 0 : index
    %c0_5 = arith.constant 0 : index
    %2 = vector.load %arg1[%c0_3, %c0_4, %c0_5] : memref<2x4x128xf32, #tpu.memory_space<vmem>>, vector<1x4x128xf32>
    %3 = vector.shape_cast %2 : vector<1x4x128xf32> to vector<4x128xf32>
    %c127_i32 = arith.constant 127 : i32
    %4 = tpu.dynamic_rotate %3 by %c127_i32 dim 1 : vector<4x128xf32>, i32 -> vector<4x128xf32>
    %c126_i32 = arith.constant 126 : i32
    %5 = tpu.dynamic_rotate %3 by %c126_i32 dim 1 : vector<4x128xf32>, i32 -> vector<4x128xf32>
    %6 = tpu.concatenate %3, %4, %5 in 0 : vector<4x128xf32>, vector<4x128xf32>, vector<4x128xf32> -> vector<12x128xf32>
    %cst = arith.constant dense<0.000000e+00> : vector<8x128xf32>
    %7 = tpu.matmul %0, %6, %cst {dimension_numbers = #tpu.dot_dimension_numbers<[1], [0], [0], [1], [0, 0, 1, 1], [], []>} : vector<8x12xf32>, vector<12x128xf32>, vector<8x128xf32> -> vector<8x128xf32>
    %8 = vector.broadcast %1 : vector<8x1xf32> to vector<8x128xf32>
    %9 = arith.addf %7, %8 : vector<8x128xf32>
    %c0_6 = arith.constant 0 : index
    %c0_7 = arith.constant 0 : index
    %c0_8 = arith.constant 0 : index
    %10 = vector.load %arg4[%c0_6, %c0_7, %c0_8] : memref<2x8x128xf32, #tpu.memory_space<vmem>>, vector<1x8x128xf32>
    %11 = vector.shape_cast %10 : vector<1x8x128xf32> to vector<8x128xf32>
    %12 = vector.shape_cast %9 : vector<8x128xf32> to vector<1x8x128xf32>
    tpu.vector_store %arg4[%c0_6, %c0_7, %c0_8], %12 {strides = array<i32>} : memref<2x8x128xf32, #tpu.memory_space<vmem>>, vector<1x8x128xf32>,
    %c1 = arith.constant 1 : index
    %c0_9 = arith.constant 0 : index
    %c0_10 = arith.constant 0 : index
    %13 = vector.load %arg1[%c1, %c0_9, %c0_10] : memref<2x4x128xf32, #tpu.memory_space<vmem>>, vector<1x4x128xf32>
    %14 = vector.shape_cast %13 : vector<1x4x128xf32> to vector<4x128xf32>
    %c127_i32_11 = arith.constant 127 : i32
    %15 = tpu.dynamic_rotate %14 by %c127_i32_11 dim 1 : vector<4x128xf32>, i32 -> vector<4x128xf32>
    %c126_i32_12 = arith.constant 126 : i32
    %16 = tpu.dynamic_rotate %14 by %c126_i32_12 dim 1 : vector<4x128xf32>, i32 -> vector<4x128xf32>
    %17 = tpu.concatenate %14, %15, %16 in 0 : vector<4x128xf32>, vector<4x128xf32>, vector<4x128xf32> -> vector<12x128xf32>
    %cst_13 = arith.constant dense<0.000000e+00> : vector<8x128xf32>
    %18 = tpu.matmul %0, %17, %cst_13 {dimension_numbers = #tpu.dot_dimension_numbers<[1], [0], [0], [1], [0, 0, 1, 1], [], []>} : vector<8x12xf32>, vector<12x128xf32>, vector<8x128xf32> -> vector<8x128xf32>
    %19 = vector.broadcast %1 : vector<8x1xf32> to vector<8x128xf32>
    %20 = arith.addf %18, %19 : vector<8x128xf32>
    %c1_14 = arith.constant 1 : index
    %c0_15 = arith.constant 0 : index
    %c0_16 = arith.constant 0 : index
    %21 = vector.load %arg4[%c1_14, %c0_15, %c0_16] : memref<2x8x128xf32, #tpu.memory_space<vmem>>, vector<1x8x128xf32>
    %22 = vector.shape_cast %21 : vector<1x8x128xf32> to vector<8x128xf32>
    %23 = vector.shape_cast %20 : vector<8x128xf32> to vector<1x8x128xf32>
    tpu.vector_store %arg4[%c1_14, %c0_15, %c0_16], %23 {strides = array<i32>} : memref<2x8x128xf32, #tpu.memory_space<vmem>>, vector<1x8x128xf32>,
    return
  }
  func.func @transform_0(%arg0: i32) -> (i32, i32, i32) {
    %c0_i32 = arith.constant 0 : i32
    %c0_i32_0 = arith.constant 0 : i32
    %c0_i32_1 = arith.constant 0 : i32
    return %arg0, %c0_i32, %c0_i32_0 : i32, i32, i32
  }
  func.func @transform_1(%arg0: i32) -> (i32, i32) {
    %c0_i32 = arith.constant 0 : i32
    %c0_i32_0 = arith.constant 0 : i32
    %c0_i32_1 = arith.constant 0 : i32
    return %c0_i32, %c0_i32_0 : i32, i32
  }
  func.func @transform_2(%arg0: i32) -> (i32, i32) {
    %c0_i32 = arith.constant 0 : i32
    %c0_i32_0 = arith.constant 0 : i32
    %c0_i32_1 = arith.constant 0 : i32
    return %c0_i32, %c0_i32_0 : i32, i32
  }
  func.func @transform_3(%arg0: i32) -> (i32, i32, i32) {
    %c0_i32 = arith.constant 0 : i32
    %c0_i32_0 = arith.constant 0 : i32
    %c0_i32_1 = arith.constant 0 : i32
    return %arg0, %c0_i32, %c0_i32_0 : i32, i32, i32
  }
}

</mosaic_0001>

<bundles_post_ra>
// kernel: tpu_custom_call.1
= control target key start
LH: loop header
LB: loop body
LE: loop exit
PB: predicated region body
PF: predicated region fallthrough
CT: control target
= control target key end

     0   :  { %8 = vsyncpa [#allocation3], 0  ;;  %s392_s0 = inlined_call_operand.vmem [shape: f32[2,4,128], index: 0, kind: input, shape index: {}]   ;;  %s393_s1 = inlined_call_operand.hbm [shape: f32[8,12], index: 1, kind: input, shape index: {}]   ;;  %s394_s2 = inlined_call_operand.vmem [shape: f32[8,1], index: 2, kind: input, shape index: {}]   ;;  %s395_s3 = inlined_call_operand.hbm [shape: f32[2,8,128], index: 3, kind: output, shape index: {}]  }
   0x1   :  { %9 = vsyncpa [#allocation4], 0  ;;  %s328_s12 = smov [#allocation2]   ;;  %s280_s16 = scalar_lea.hbm %s393_s1, 128 }
   0x2   :  { %s18_s13 = sshll.u32 %s328_s12, 4  ;;  %p281_p0 = scmp.ne.s32.totalorder %s393_s1, %s280_s16  ;;  %s19_s13 = int_to_ptr.vmem [resolvable:$true] %s18_s13 }
   0x3   :  { %p284_p1 = scmp.lt.u32.totalorder %s280_s16, %s393_s1 }
   0x5   :  { %p286_p2 = pnand %p284_p1, %p281_p0 }
   0x7   :  { %289 = shalt.err (!%p286_p2)
}
   0x8   :  { %s290_s21 = scalar_lea.vmem %s19_s13, 128  ;;  %p295_p4 = scmp.lt.s32.totalorder %s19_s13, %s19_s13 }
   0x9   :  { %p291_p3 = scmp.ne.s32.totalorder %s19_s13, %s290_s21  ;;  %p296_p5 = scmp.lt.s32.totalorder %s290_s21, %s290_s21 }
   0xb   :  { %p297_p6 = por %p296_p5, %p295_p4 }
   0xd   :  { %p298_p7 = pnand %p297_p6, %p291_p3 }
   0xf   :  { %301 = shalt.err (!%p298_p7)
}
  0x10   :  { %21 = dma.hbm_to_vmem [thread:$0]  %s393_s1, 128, %s19_s13, [#allocation3]  }
  0x11   :  { %324 = dma.done.wait [#allocation3], 128  }
  0x12   :  { %325 = vsyncadd [#allocation3], 4294967168  ;;  %v329_v0 = vmov 0.0|0.0   ;;  %vm330_vm0 = vmmov 0   ;;  %v331_v1 = vmov 0.0   ;;  %v28_v5 = vld [vmem:[%s394_s2] sm:$0xff] }
  0x13   :  { %249 = vmatprep.subr.bf16.mxu0 %v329_v0  ;;  %253 = vmatprep.subr.bf16.mxu1 %v329_v0  ;;  %v29_v2 = vld [vmem:[%s392_s0] sm:$0xf]  ;;  %v226_v3 = vld [vmem:[%s392_s0 + $0x4] sm:$0xf]  ;;  %v332_v6 = vmov 0   ;;  %s333_s29 = smov 127  }
  0x14   :  { %239 = vmatprep.mubr.msk.f32.mxu0 %vm330_vm0, %v331_v1  ;;  %246 = vmatprep.mubr.msk.f32.mxu1 %vm330_vm0, %v331_v1  ;;  %v268_v4 = vpack.i.bf16 %v226_v3, %v29_v2  ;;  %s334_s30 = smov 126   ;;  %vm37_vm1 = vcmask 1043456   ;;  %vm335_vm2 = vmmov 1   ;;  %v27_v19 = vld [vmem:[#allocation2] sm:$0xff]  ;;  %vm44_vm4 = vcmask 97280   ;;  %s336_s0 = smov [#allocation5]  }
  0x15   :  { %278 = vset.pattern.permute.xlu1 %v332_v6  ;;  %279 = vset.pattern.permute.xlu0 %v332_v6  ;;  %vm251_vm3 = vmpackc.low %vm37_vm1, %vm335_vm2  ;;  %s212_s2 = sshll.u32 %s336_s0, 4  ;;  %s213_s2 = int_to_ptr.vmem [resolvable:$true] %s212_s2 }
  0x16   :  { %269 = vrot.lane.b32.xlu0 %v268_v4, %s333_s29  ;;  %41 = vperm.xlu1 %278, %v28_v5   ;;  %s302_s4 = scalar_lea.vmem %s213_s2, 256  ;;  %p307_p9 = scmp.lt.s32.totalorder %s213_s2, %s213_s2 }
  0x17   :  { %p303_p8 = scmp.ne.s32.totalorder %s213_s2, %s302_s4  ;;  %p308_p10 = scmp.lt.s32.totalorder %s302_s4, %s302_s4 }
  0x19   :  { %p309_p11 = por %p308_p10, %p307_p9 }
  0x1a   :  { %274 = vrot.lane.b32.xlu0 %v268_v4, %s334_s30 }
  0x1b   :  { %p310_p12 = pnand %p309_p11, %p303_p8 }
  0x88   :  { %v270_v7 = vpop.permute.xlu0 %269 }
  0x89   :  { %v272_v8 = vunpack.i.h.bf16 %v270_v7  ;;  %v271_v9 = vunpack.i.l.bf16 %v270_v7 }
  0x8b   :  { %v129_v10 = vrot.slane %v272_v8, 4  ;;  %v35_v11 = vrot.slane %v271_v9, 4 }
  0x8c   :  { %v275_v12 = vpop.permute.xlu0 %274 }
  0x8d   :  { %v277_v13 = vunpack.i.h.bf16 %v275_v12  ;;  %v276_v14 = vunpack.i.l.bf16 %v275_v12  ;;  %v38_v15 = vsel %vm37_vm1, %v29_v2, %v35_v11  ;;  %v131_v16 = vsel %vm37_vm1, %v226_v3, %v129_v10 }
  0x8f   :  { %v250_v17 = vpack.c.bf16 %v276_v14, %v38_v15  ;;  %v254_v18 = vpack.c.bf16 %v277_v13, %v131_v16 }
  0x91   :  { %252 = vmatpush3.bf16.msk.msra.mxu0 %vm251_vm3, %v250_v17  ;;  %256 = vmatpush3.bf16.msk.msra.mxu1 %vm251_vm3, %v254_v18 }
  0x94   :  { %240 = vmatmul.mubr.msk.f32.vlgmr.msra.gmra.mrb[0].mxu0 %vm44_vm4, %v27_v19  ;;  %247 = vmatmul.mubr.msk.f32.vlgmr.msra.gmra.mrb[0].mxu1 %vm44_vm4, %v27_v19 }
  0x95   :  { %v42_v20 = vpop.permute.xlu1 %41 }
 0x167   :  { %v117_v21 = vpop.f32.mrb[0].mxu0  ;;  %v201_v22 = vpop.f32.mrb[0].mxu1 }
 0x168   :  { %v118_v23 = vadd.f32 %v117_v21, %v42_v20  ;;  %v202_v24 = vadd.f32 %v201_v22, %v42_v20  ;;  %v241_v25 = vpop.f32.mrb[1].mxu0  ;;  %v248_v26 = vpop.f32.mrb[1].mxu1 }
 0x16a   :  { %121 = vst [vmem:[#allocation5] sm:$0xff] %v118_v23  ;;  %206 = vst [vmem:[#allocation5 + $0x8] sm:$0xff] %v202_v24 }
 0x16b   :  { %313 = shalt.err (!%p310_p12)
}
 0x16c   :  { %s314_s7 = scalar_lea.hbm %s395_s3, 256 }
 0x16d   :  { %p315_p13 = scmp.ne.s32.totalorder %s395_s3, %s314_s7  ;;  %p318_p0 = scmp.lt.u32.totalorder %s314_s7, %s395_s3 }
 0x16f   :  { %p320_p1 = pnand %p318_p0, %p315_p13 }
 0x171   :  { %323 = shalt.err (!%p320_p1)
}
 0x172   :  { %s337_s12 = smov 128   ;;  %s338_s13 = smov 8  }
 0x173   :  { %218 = dma.vmem_to_hbm [thread:$0]  %s213_s2, 256, %s395_s3, [#allocation4], %s337_s12, %s337_s12, %s338_s13  }
 0x174   :  { %326 = dma.done.wait [#allocation4], 256  }
 0x175   :  { %327 = vsyncadd [#allocation4], 4294967040 }
 0x176   :  { %222 = vsyncpa [#allocation3], 1 }
 0x177   :  { %223 = vsyncpa [#allocation4], 1 }

</bundles_post_ra>
